<compile_context>
chip_gen: v7x
topology: tpu7x:2x2x1
jax: 0.10.0
libtpu: 0.0.40
codegen_flags: <defaults>
</compile_context>

<pallas_src>
import functools

import numpy as np
import jax
import jax.numpy as jnp
from jax import lax
from jax.experimental import pallas as pl
from jax.experimental.pallas import tpu as pltpu


def _round_up(x, m):
    return (x + m - 1) // m * m


# Bring the whole PE table into VMEM when it is at most this many bytes;
# above that, fall back to per-row DMA gather straight from HBM.
_PE_TABLE_VMEM_LIMIT = 4 << 20  # 4 MiB


# -----------------------------------------------------------------------------
# Init-time parameter preparation (run ONCE, outside the forward pass).
# -----------------------------------------------------------------------------
def prepare_timestep_embedder(pe, w1, b1, w2, b2, weight_dtype=jnp.float32):
    """Pad/cast the PE table and MLP params to lane-dense TPU layouts, once.

    pe: [max_len, 1, D]; w1/w2: [D, D] stored as [in, out]; b1/b2: [1, D] or [D].
    Zero-padding D -> D_pad (multiple of 128) is exact for Linear->SiLU->Linear
    because SiLU(0) == 0 and the padded weight rows/cols are zero.
    For realistic widths (D >= 256) pass weight_dtype=jnp.bfloat16: weights are
    streamed in bf16 while both matmuls still accumulate in f32 on the MXU.
    """
    max_len, _, D = pe.shape
    D_pad = _round_up(D, 128)
    pad_d = D_pad - D

    pe_p = jnp.pad(pe.astype(jnp.float32).reshape(max_len, D), ((0, 0), (0, pad_d)))
    w1_p = jnp.pad(w1.astype(jnp.float32), ((0, pad_d), (0, pad_d))).astype(weight_dtype)
    w2_p = jnp.pad(w2.astype(jnp.float32), ((0, pad_d), (0, pad_d))).astype(weight_dtype)
    b1_p = jnp.pad(jnp.reshape(b1, (1, D)).astype(jnp.float32), ((0, 0), (0, pad_d)))
    b2_p = jnp.pad(jnp.reshape(b2, (1, D)).astype(jnp.float32), ((0, 0), (0, pad_d)))

    return {"pe": pe_p, "w1": w1_p, "b1": b1_p, "w2": w2_p, "b2": b2_p,
            "D": D, "D_pad": D_pad, "max_len": max_len}


# -----------------------------------------------------------------------------
# Kernels
# -----------------------------------------------------------------------------
def _mlp_body(x_vmem, w1_ref, b1_ref, w2_ref, b2_ref, o_ref):
    """Linear -> SiLU -> Linear on a lane-dense [B_pad, D_pad] slab."""
    w_dtype = w1_ref.dtype
    x = x_vmem[...].astype(w_dtype)
    h = jnp.dot(x, w1_ref[...], preferred_element_type=jnp.float32) + b1_ref[...]
    # SiLU = h * sigmoid(h); exp and the exact reciprocal both issue on the
    # (otherwise idle) EUP slot. approx=False keeps bit-level fidelity.
    h = h * pl.reciprocal(1.0 + jnp.exp(-h), approx=False)
    o = jnp.dot(h.astype(w_dtype), w2_ref[...],
                preferred_element_type=jnp.float32) + b2_ref[...]
    o_ref[...] = o.astype(o_ref.dtype)


def _embedder_kernel_vmem_table(ts_ref,                     # SMEM [B_pad] int32
                                pe_ref,                     # VMEM [max_len, D_pad]
                                w1_ref, b1_ref, w2_ref, b2_ref,
                                o_ref,                      # VMEM [B_pad, D_pad]
                                x_vmem,                     # scratch [B_pad, D_pad]
                                *, n_rows):
    """Small-table path: whole PE table resident in VMEM, gather is in-VMEM."""
    # Zero the slab so padded batch rows hold well-defined (and discarded) values.
    x_vmem[...] = jnp.zeros_like(x_vmem)

    def _gather(i, carry):
        x_vmem[pl.ds(i, 1), :] = pe_ref[pl.ds(ts_ref[i], 1), :]
        return carry

    lax.fori_loop(0, n_rows, _gather, 0, unroll=True)
    _mlp_body(x_vmem, w1_ref, b1_ref, w2_ref, b2_ref, o_ref)


def _embedder_kernel_hbm_gather(ts_ref,                     # SMEM [B_pad] int32
                                pe_hbm,                     # HBM  [max_len, D_pad]
                                w1_ref, b1_ref, w2_ref, b2_ref,
                                o_ref,
                                x_vmem, sem,                # scratch slab + shared sem
                                *, n_rows):
    """Large-table path: per-row DMA gather HBM -> VMEM (table stays in HBM)."""
    x_vmem[...] = jnp.zeros_like(x_vmem)

    # Issue every row DMA up front; all ts_ref reads happen before any wait.
    def _start(i, carry):
        pltpu.make_async_copy(pe_hbm.at[pl.ds(ts_ref[i], 1)],
                              x_vmem.at[pl.ds(i, 1)],
                              sem).start()
        return carry

    lax.fori_loop(0, n_rows, _start, 0, unroll=True)

    # Waits only need dst shape + semaphore: a constant source index avoids
    # post-wait ts_ref loads (which would stall on broken sst->sld forwarding).
    def _wait(i, carry):
        pltpu.make_async_copy(pe_hbm.at[pl.ds(0, 1)],
                              x_vmem.at[pl.ds(i, 1)],
                              sem).wait()
        return carry

    lax.fori_loop(0, n_rows, _wait, 0, unroll=True)
    _mlp_body(x_vmem, w1_ref, b1_ref, w2_ref, b2_ref, o_ref)


# -----------------------------------------------------------------------------
# Forward wrapper (per-call work: pad B tiny int32 timesteps, launch kernel)
# -----------------------------------------------------------------------------
def timestep_embedder_forward(params, timesteps):
    """timesteps: [B] int -> [1, B, D]  (== time_embed(pe[t]).permute(1,0,2))."""
    B = int(timesteps.shape[0])
    D, D_pad, max_len = params["D"], params["D_pad"], params["max_len"]
    pe_p = params["pe"]
    w1_p, b1_p, w2_p, b2_p = params["w1"], params["b1"], params["w2"], params["b2"]
    w_itemsize = jnp.dtype(w1_p.dtype).itemsize

    B_pad = _round_up(max(B, 1), 8)                 # full sublanes
    ts_p = jnp.pad(timesteps.astype(jnp.int32), (0, B_pad - B))

    pe_bytes = max_len * D_pad * 4
    use_vmem_table = pe_bytes <= _PE_TABLE_VMEM_LIMIT

    def full_spec(shape):
        return pl.BlockSpec(shape, lambda i, ts: (0,) * len(shape))

    weight_spec = full_spec((D_pad, D_pad))
    bias_spec = full_spec((1, D_pad))
    out_spec = full_spec((B_pad, D_pad))

    if use_vmem_table:
        kernel = functools.partial(_embedder_kernel_vmem_table, n_rows=B)
        pe_spec = full_spec((max_len, D_pad))
        scratch = [pltpu.VMEM((B_pad, D_pad), jnp.float32)]
        pe_streamed_bytes = pe_bytes
    else:
        kernel = functools.partial(_embedder_kernel_hbm_gather, n_rows=B)
        pe_spec = pl.BlockSpec(memory_space=pl.ANY)     # table stays in HBM
        scratch = [pltpu.VMEM((B_pad, D_pad), jnp.float32),
                   pltpu.SemaphoreType.DMA(())]          # single shared DMA sem
        pe_streamed_bytes = B * D_pad * 4

    flops = 2 * 2 * B_pad * D_pad * D_pad + 6 * B_pad * D_pad
    bytes_accessed = (4 * B_pad                              # timesteps (int32)
                      + pe_streamed_bytes                    # table / gathered rows
                      + 2 * D_pad * D_pad * w_itemsize       # w1, w2
                      + 2 * 4 * D_pad                        # b1, b2
                      + 4 * B_pad * D_pad)                   # output

    # VMEM budget with headroom (inputs are double-buffered by default).
    # TODO(synk): for D_pad >= ~1024 on v7x (64 MiB VMEM) go bf16 + K-tile the
    # weights over a grid axis instead of a single un-pipelined grid step.
    vmem_limit = int(2 * (pe_bytes if use_vmem_table else 0)
                     + 2 * 2 * D_pad * D_pad * w_itemsize
                     + 4 * 4 * D_pad
                     + 3 * 4 * B_pad * D_pad
                     + (2 << 20))
    vmem_limit = min(max(vmem_limit, 4 << 20), 48 << 20)

    out = pl.pallas_call(
        kernel,
        out_shape=jax.ShapeDtypeStruct((B_pad, D_pad), jnp.float32),
        grid_spec=pltpu.PrefetchScalarGridSpec(
            num_scalar_prefetch=1,
            grid=(1,),
            in_specs=[pe_spec, weight_spec, bias_spec, weight_spec, bias_spec],
            out_specs=out_spec,
            scratch_shapes=scratch,
        ),
        compiler_params=pltpu.CompilerParams(
            dimension_semantics=("arbitrary",),
            vmem_limit_bytes=vmem_limit,
        ),
        cost_estimate=pl.CostEstimate(
            flops=flops,
            transcendentals=B_pad * D_pad,
            bytes_accessed=bytes_accessed,
        ),
    )(ts_p, pe_p, w1_p, b1_p, w2_p, b2_p)

    # Drop padding, then permute(1, 0, 2) of [B, 1, D] -> [1, B, D].
    return out[:B, :D][None, :, :]


# -----------------------------------------------------------------------------
# Reference + test harness
# -----------------------------------------------------------------------------
def make_sinusoidal_pe(max_len, d_model, dtype=jnp.float32):
    """Standard PositionalEncoding table of shape [max_len, 1, d_model]."""
    position = np.arange(max_len)[:, None].astype(np.float64)
    div_term = np.exp(np.arange(0, d_model, 2).astype(np.float64) *
                      (-np.log(10000.0) / d_model))
    pe = np.zeros((max_len, d_model), dtype=np.float64)
    pe[:, 0::2] = np.sin(position * div_term)
    pe[:, 1::2] = np.cos(position * div_term)
    return jnp.asarray(pe[:, None, :], dtype=dtype)  # [max_len, 1, D]


def reference_forward(timesteps, pe, w1, b1, w2, b2):
    x = pe[timesteps]                      # [B, 1, D]
    h = x @ w1 + b1                        # Linear 1
    h = h * jax.nn.sigmoid(h)              # SiLU
    y = h @ w2 + b2                        # Linear 2
    return jnp.transpose(y, (1, 0, 2))     # permute(1, 0, 2) -> [1, B, D]


if __name__ == "__main__":
    latent_dim = 32
    max_len = 64
    batch = 8

    key = jax.random.PRNGKey(0)
    k1, k2, k3, k4, k5 = jax.random.split(key, 5)

    # Deterministic synthetic parameters (Linear(D, D) weights stored as [in, out]).
    scale = 1.0 / np.sqrt(latent_dim)
    w1 = jax.random.uniform(k1, (latent_dim, latent_dim), jnp.float32, -scale, scale)
    b1 = jax.random.uniform(k2, (1, latent_dim), jnp.float32, -scale, scale)
    w2 = jax.random.uniform(k3, (latent_dim, latent_dim), jnp.float32, -scale, scale)
    b2 = jax.random.uniform(k4, (1, latent_dim), jnp.float32, -scale, scale)

    pe = make_sinusoidal_pe(max_len, latent_dim)
    timesteps = jax.random.randint(k5, (batch,), 0, max_len, dtype=jnp.int32)

    # Padding / casting happens ONCE here ("init time"), not per forward call.
    params = prepare_timestep_embedder(pe, w1, b1, w2, b2)

    out = timestep_embedder_forward(params, timesteps)
    out = jax.block_until_ready(out)

    ref = reference_forward(timesteps, pe, w1, b1, w2, b2)
    assert out.shape == (1, batch, latent_dim), out.shape
    # Tolerance covers MXU-vs-XLA f32 matmul pass-count differences only
    # (sigmoid is exact now that approx=False is used).
    np.testing.assert_allclose(np.asarray(out), np.asarray(ref), rtol=1e-3, atol=1e-3)

    print("KERNEL_OK")
</pallas_src>

<mosaic_0001>
module attributes {stable_mosaic.version = 11 : i64} {
  func.func @_embedder_kernel_vmem_table(%arg0: i32, %arg1: memref<8xi32, #tpu.memory_space<smem>>, %arg2: memref<64x128xf32, #tpu.memory_space<vmem>>, %arg3: memref<128x128xf32, #tpu.memory_space<vmem>>, %arg4: memref<1x128xf32, #tpu.memory_space<vmem>>, %arg5: memref<128x128xf32, #tpu.memory_space<vmem>>, %arg6: memref<1x128xf32, #tpu.memory_space<vmem>>, %arg7: memref<8x128xf32, #tpu.memory_space<vmem>>, %arg8: memref<8x128xf32, #tpu.memory_space<vmem>>) attributes {dimension_semantics = [#tpu.dimension_semantics<arbitrary>], iteration_bounds = array<i64: 1>, scalar_prefetch = 1 : i64, scratch_operands = 1 : i64, tpu.core_type = #tpu.core_type<tc>, window_params = [{pipeline_mode = #tpu.pipeline_mode<synchronous>, transform_indices = @transform_0, window_bounds = array<i64: 64, 128>}, {pipeline_mode = #tpu.pipeline_mode<synchronous>, transform_indices = @transform_1, window_bounds = array<i64: 128, 128>}, {pipeline_mode = #tpu.pipeline_mode<synchronous>, transform_indices = @transform_2, window_bounds = array<i64: 1, 128>}, {pipeline_mode = #tpu.pipeline_mode<synchronous>, transform_indices = @transform_3, window_bounds = array<i64: 128, 128>}, {pipeline_mode = #tpu.pipeline_mode<synchronous>, transform_indices = @transform_4, window_bounds = array<i64: 1, 128>}, {pipeline_mode = #tpu.pipeline_mode<synchronous>, transform_indices = @transform_5, window_bounds = array<i64: 8, 128>}]} {
    %cst = arith.constant 0.000000e+00 : f32
    %0 = vector.broadcast %cst : f32 to vector<8x128xf32>
    %c0 = arith.constant 0 : index
    %c0_0 = arith.constant 0 : index
    %1 = vector.load %arg8[%c0, %c0_0] : memref<8x128xf32, #tpu.memory_space<vmem>>, vector<8x128xf32>
    tpu.vector_store %arg8[%c0, %c0_0], %0 {strides = array<i32>} : memref<8x128xf32, #tpu.memory_space<vmem>>, vector<8x128xf32>,
    %c0_i32 = arith.constant 0 : i32
    %2 = arith.index_cast %c0_i32 : i32 to index
    %3 = memref.load %arg1[%2] : memref<8xi32, #tpu.memory_space<smem>>
    %4 = arith.index_cast %3 : i32 to index
    %c0_1 = arith.constant 0 : index
    %5 = vector.load %arg2[%4, %c0_1] : memref<64x128xf32, #tpu.memory_space<vmem>>, vector<1x128xf32>
    %6 = arith.index_cast %c0_i32 : i32 to index
    %c0_2 = arith.constant 0 : index
    %7 = vector.load %arg8[%6, %c0_2] : memref<8x128xf32, #tpu.memory_space<vmem>>, vector<1x128xf32>
    tpu.vector_store %arg8[%6, %c0_2], %5 {strides = array<i32>} : memref<8x128xf32, #tpu.memory_space<vmem>>, vector<1x128xf32>,
    %c1_i32 = arith.constant 1 : i32
    %8 = arith.index_cast %c1_i32 : i32 to index
    %9 = memref.load %arg1[%8] : memref<8xi32, #tpu.memory_space<smem>>
    %10 = arith.index_cast %9 : i32 to index
    %c0_3 = arith.constant 0 : index
    %11 = vector.load %arg2[%10, %c0_3] : memref<64x128xf32, #tpu.memory_space<vmem>>, vector<1x128xf32>
    %12 = arith.index_cast %c1_i32 : i32 to index
    %c0_4 = arith.constant 0 : index
    %13 = vector.load %arg8[%12, %c0_4] : memref<8x128xf32, #tpu.memory_space<vmem>>, vector<1x128xf32>
    tpu.vector_store %arg8[%12, %c0_4], %11 {strides = array<i32>} : memref<8x128xf32, #tpu.memory_space<vmem>>, vector<1x128xf32>,
    %c2_i32 = arith.constant 2 : i32
    %14 = arith.index_cast %c2_i32 : i32 to index
    %15 = memref.load %arg1[%14] : memref<8xi32, #tpu.memory_space<smem>>
    %16 = arith.index_cast %15 : i32 to index
    %c0_5 = arith.constant 0 : index
    %17 = vector.load %arg2[%16, %c0_5] : memref<64x128xf32, #tpu.memory_space<vmem>>, vector<1x128xf32>
    %18 = arith.index_cast %c2_i32 : i32 to index
    %c0_6 = arith.constant 0 : index
    %19 = vector.load %arg8[%18, %c0_6] : memref<8x128xf32, #tpu.memory_space<vmem>>, vector<1x128xf32>
    tpu.vector_store %arg8[%18, %c0_6], %17 {strides = array<i32>} : memref<8x128xf32, #tpu.memory_space<vmem>>, vector<1x128xf32>,
    %c3_i32 = arith.constant 3 : i32
    %20 = arith.index_cast %c3_i32 : i32 to index
    %21 = memref.load %arg1[%20] : memref<8xi32, #tpu.memory_space<smem>>
    %22 = arith.index_cast %21 : i32 to index
    %c0_7 = arith.constant 0 : index
    %23 = vector.load %arg2[%22, %c0_7] : memref<64x128xf32, #tpu.memory_space<vmem>>, vector<1x128xf32>
    %24 = arith.index_cast %c3_i32 : i32 to index
    %c0_8 = arith.constant 0 : index
    %25 = vector.load %arg8[%24, %c0_8] : memref<8x128xf32, #tpu.memory_space<vmem>>, vector<1x128xf32>
    tpu.vector_store %arg8[%24, %c0_8], %23 {strides = array<i32>} : memref<8x128xf32, #tpu.memory_space<vmem>>, vector<1x128xf32>,
    %c4_i32 = arith.constant 4 : i32
    %26 = arith.index_cast %c4_i32 : i32 to index
    %27 = memref.load %arg1[%26] : memref<8xi32, #tpu.memory_space<smem>>
    %28 = arith.index_cast %27 : i32 to index
    %c0_9 = arith.constant 0 : index
    %29 = vector.load %arg2[%28, %c0_9] : memref<64x128xf32, #tpu.memory_space<vmem>>, vector<1x128xf32>
    %30 = arith.index_cast %c4_i32 : i32 to index
    %c0_10 = arith.constant 0 : index
    %31 = vector.load %arg8[%30, %c0_10] : memref<8x128xf32, #tpu.memory_space<vmem>>, vector<1x128xf32>
    tpu.vector_store %arg8[%30, %c0_10], %29 {strides = array<i32>} : memref<8x128xf32, #tpu.memory_space<vmem>>, vector<1x128xf32>,
    %c5_i32 = arith.constant 5 : i32
    %32 = arith.index_cast %c5_i32 : i32 to index
    %33 = memref.load %arg1[%32] : memref<8xi32, #tpu.memory_space<smem>>
    %34 = arith.index_cast %33 : i32 to index
    %c0_11 = arith.constant 0 : index
    %35 = vector.load %arg2[%34, %c0_11] : memref<64x128xf32, #tpu.memory_space<vmem>>, vector<1x128xf32>
    %36 = arith.index_cast %c5_i32 : i32 to index
    %c0_12 = arith.constant 0 : index
    %37 = vector.load %arg8[%36, %c0_12] : memref<8x128xf32, #tpu.memory_space<vmem>>, vector<1x128xf32>
    tpu.vector_store %arg8[%36, %c0_12], %35 {strides = array<i32>} : memref<8x128xf32, #tpu.memory_space<vmem>>, vector<1x128xf32>,
    %c6_i32 = arith.constant 6 : i32
    %38 = arith.index_cast %c6_i32 : i32 to index
    %39 = memref.load %arg1[%38] : memref<8xi32, #tpu.memory_space<smem>>
    %40 = arith.index_cast %39 : i32 to index
    %c0_13 = arith.constant 0 : index
    %41 = vector.load %arg2[%40, %c0_13] : memref<64x128xf32, #tpu.memory_space<vmem>>, vector<1x128xf32>
    %42 = arith.index_cast %c6_i32 : i32 to index
    %c0_14 = arith.constant 0 : index
    %43 = vector.load %arg8[%42, %c0_14] : memref<8x128xf32, #tpu.memory_space<vmem>>, vector<1x128xf32>
    tpu.vector_store %arg8[%42, %c0_14], %41 {strides = array<i32>} : memref<8x128xf32, #tpu.memory_space<vmem>>, vector<1x128xf32>,
    %c7_i32 = arith.constant 7 : i32
    %44 = arith.index_cast %c7_i32 : i32 to index
    %45 = memref.load %arg1[%44] : memref<8xi32, #tpu.memory_space<smem>>
    %46 = arith.index_cast %45 : i32 to index
    %c0_15 = arith.constant 0 : index
    %47 = vector.load %arg2[%46, %c0_15] : memref<64x128xf32, #tpu.memory_space<vmem>>, vector<1x128xf32>
    %48 = arith.index_cast %c7_i32 : i32 to index
    %c0_16 = arith.constant 0 : index
    %49 = vector.load %arg8[%48, %c0_16] : memref<8x128xf32, #tpu.memory_space<vmem>>, vector<1x128xf32>
    tpu.vector_store %arg8[%48, %c0_16], %47 {strides = array<i32>} : memref<8x128xf32, #tpu.memory_space<vmem>>, vector<1x128xf32>,
    %c8_i32 = arith.constant 8 : i32
    %c0_17 = arith.constant 0 : index
    %c0_18 = arith.constant 0 : index
    %50 = vector.load %arg8[%c0_17, %c0_18] : memref<8x128xf32, #tpu.memory_space<vmem>>, vector<8x128xf32>
    %c0_19 = arith.constant 0 : index
    %c0_20 = arith.constant 0 : index
    %51 = vector.load %arg3[%c0_19, %c0_20] : memref<128x128xf32, #tpu.memory_space<vmem>>, vector<128x128xf32>
    %cst_21 = arith.constant dense<0.000000e+00> : vector<8x128xf32>
    %52 = tpu.matmul %50, %51, %cst_21 {dimension_numbers = #tpu.dot_dimension_numbers<[1], [0], [0], [1], [0, 0, 1, 1], [], []>} : vector<8x128xf32>, vector<128x128xf32>, vector<8x128xf32> -> vector<8x128xf32>
    %c0_22 = arith.constant 0 : index
    %c0_23 = arith.constant 0 : index
    %53 = vector.load %arg4[%c0_22, %c0_23] : memref<1x128xf32, #tpu.memory_space<vmem>>, vector<1x128xf32>
    %54 = vector.broadcast %53 : vector<1x128xf32> to vector<8x128xf32>
    %55 = arith.addf %52, %54 : vector<8x128xf32>
    %cst_24 = arith.constant 0.000000e+00 : f32
    %56 = vector.broadcast %cst_24 : f32 to vector<8x128xf32>
    %57 = arith.subf %56, %55 : vector<8x128xf32>
    %58 = math.exp %57 : vector<8x128xf32>
    %cst_25 = arith.constant 1.000000e+00 : f32
    %59 = vector.broadcast %cst_25 : f32 to vector<8x128xf32>
    %60 = arith.addf %59, %58 : vector<8x128xf32>
    %61 = tpu.reciprocal %60 : vector<8x128xf32> -> vector<8x128xf32>
    %62 = arith.mulf %55, %61 : vector<8x128xf32>
    %c0_26 = arith.constant 0 : index
    %c0_27 = arith.constant 0 : index
    %63 = vector.load %arg5[%c0_26, %c0_27] : memref<128x128xf32, #tpu.memory_space<vmem>>, vector<128x128xf32>
    %cst_28 = arith.constant dense<0.000000e+00> : vector<8x128xf32>
    %64 = tpu.matmul %62, %63, %cst_28 {dimension_numbers = #tpu.dot_dimension_numbers<[1], [0], [0], [1], [0, 0, 1, 1], [], []>} : vector<8x128xf32>, vector<128x128xf32>, vector<8x128xf32> -> vector<8x128xf32>
    %c0_29 = arith.constant 0 : index
    %c0_30 = arith.constant 0 : index
    %65 = vector.load %arg6[%c0_29, %c0_30] : memref<1x128xf32, #tpu.memory_space<vmem>>, vector<1x128xf32>
    %66 = vector.broadcast %65 : vector<1x128xf32> to vector<8x128xf32>
    %67 = arith.addf %64, %66 : vector<8x128xf32>
    %c0_31 = arith.constant 0 : index
    %c0_32 = arith.constant 0 : index
    %68 = vector.load %arg7[%c0_31, %c0_32] : memref<8x128xf32, #tpu.memory_space<vmem>>, vector<8x128xf32>
    tpu.vector_store %arg7[%c0_31, %c0_32], %67 {strides = array<i32>} : memref<8x128xf32, #tpu.memory_space<vmem>>, vector<8x128xf32>,
    return
  }
  func.func @transform_0(%arg0: i32, %arg1: memref<8xi32, #tpu.memory_space<smem>>) -> (i32, i32) {
    %c0_i32 = arith.constant 0 : i32
    %c0_i32_0 = arith.constant 0 : i32
    %c0_i32_1 = arith.constant 0 : i32
    return %c0_i32, %c0_i32_0 : i32, i32
  }
  func.func @transform_1(%arg0: i32, %arg1: memref<8xi32, #tpu.memory_space<smem>>) -> (i32, i32) {
    %c0_i32 = arith.constant 0 : i32
    %c0_i32_0 = arith.constant 0 : i32
    %c0_i32_1 = arith.constant 0 : i32
    return %c0_i32, %c0_i32_0 : i32, i32
  }
  func.func @transform_2(%arg0: i32, %arg1: memref<8xi32, #tpu.memory_space<smem>>) -> (i32, i32) {
    %c0_i32 = arith.constant 0 : i32
    %c0_i32_0 = arith.constant 0 : i32
    %c0_i32_1 = arith.constant 0 : i32
    return %c0_i32, %c0_i32_0 : i32, i32
  }
  func.func @transform_3(%arg0: i32, %arg1: memref<8xi32, #tpu.memory_space<smem>>) -> (i32, i32) {
    %c0_i32 = arith.constant 0 : i32
    %c0_i32_0 = arith.constant 0 : i32
    %c0_i32_1 = arith.constant 0 : i32
    return %c0_i32, %c0_i32_0 : i32, i32
  }
  func.func @transform_4(%arg0: i32, %arg1: memref<8xi32, #tpu.memory_space<smem>>) -> (i32, i32) {
    %c0_i32 = arith.constant 0 : i32
    %c0_i32_0 = arith.constant 0 : i32
    %c0_i32_1 = arith.constant 0 : i32
    return %c0_i32, %c0_i32_0 : i32, i32
  }
  func.func @transform_5(%arg0: i32, %arg1: memref<8xi32, #tpu.memory_space<smem>>) -> (i32, i32) {
    %c0_i32 = arith.constant 0 : i32
    %c0_i32_0 = arith.constant 0 : i32
    %c0_i32_1 = arith.constant 0 : i32
    return %c0_i32, %c0_i32_0 : i32, i32
  }
}

</mosaic_0001>

<bundles_post_ra>
// kernel: tpu_custom_call.1
= control target key start
LH: loop header
LB: loop body
LE: loop exit
PB: predicated region body
PF: predicated region fallthrough
CT: control target
= control target key end

     0   :  { %s751_s0 = inlined_call_operand.hbm [shape: s32[8], index: 0, kind: input, shape index: {}]   ;;  %s752_s1 = inlined_call_operand.hbm [shape: f32[64,128], index: 1, kind: input, shape index: {}]   ;;  %s753_s2 = inlined_call_operand.hbm [shape: f32[128,128], index: 2, kind: input, shape index: {}]   ;;  %s754_s3 = inlined_call_operand.vmem [shape: f32[1,128], index: 3, kind: input, shape index: {}]   ;;  %s755_s4 = inlined_call_operand.hbm [shape: f32[128,128], index: 4, kind: input, shape index: {}]   ;;  %s756_s5 = inlined_call_operand.vmem [shape: f32[1,128], index: 5, kind: input, shape index: {}]   ;;  %s757_s6 = inlined_call_operand.hbm [shape: f32[8,128], index: 6, kind: output, shape index: {}]  }
   0x1   :  { %s493_s23 = scalar_lea.hbm %s751_s0, 16 }
   0x2   :  { %p494_p0 = scmp.ne.s32.totalorder %s751_s0, %s493_s23  ;;  %p497_p1 = scmp.lt.u32.totalorder %s493_s23, %s751_s0 }
   0x4   :  { %p499_p2 = pnand %p497_p1, %p494_p0 }
   0x6   :  { %502 = shalt.err (!%p499_p2)  }
   0x7   :  { %s599_s28 = smov [#allocation4]  }
   0x8   :  { %12 = dma.hbm_to_smem %s751_s0, 16, %s599_s28, [#allocation3] }
   0x9   :  { %591 = dma.done.wait [#allocation3], 16 }
   0xa   :  { %592 = vsyncadd [#allocation3], 4294967280 }
   0xb   :  { %14 = sfence }
   0xc   :  { %15 = vsyncpa [#allocation6], 0 }
   0xd   :  { %16 = vsyncpa [#allocation9], 0 }
   0xe   :  { %17 = vsyncpa [#allocation7], 0  ;;  %s600_s7 = smov [#allocation8]   ;;  %s601_s9 = smov [#allocation5]  }
   0xf   :  { %s35_s8 = sshll.u32 %s600_s7, 4  ;;  %s23_s10 = sshll.u32 %s601_s9, 4  ;;  %s36_s8 = int_to_ptr.vmem [resolvable:$true] %s35_s8  ;;  %s656_s10 = int_to_ptr.vmem [resolvable:$true] %s23_s10 }
  0x10   :  { %s503_s13 = scalar_lea.hbm %s753_s2, 2048 }
  0x11   :  { %p504_p3 = scmp.ne.s32.totalorder %s753_s2, %s503_s13  ;;  %p507_p4 = scmp.lt.u32.totalorder %s503_s13, %s753_s2 }
  0x13   :  { %p509_p5 = pnand %p507_p4, %p504_p3 }
  0x15   :  { %512 = shalt.err (!%p509_p5)
}
  0x16   :  { %s513_s17 = scalar_lea.vmem %s36_s8, 2048  ;;  %p518_p7 = scmp.lt.s32.totalorder %s36_s8, %s36_s8 }
  0x17   :  { %p514_p6 = scmp.ne.s32.totalorder %s36_s8, %s513_s17  ;;  %p519_p8 = scmp.lt.s32.totalorder %s513_s17, %s513_s17 }
  0x19   :  { %p520_p9 = por %p519_p8, %p518_p7 }
  0x1b   :  { %p521_p10 = pnand %p520_p9, %p514_p6 }
  0x1d   :  { %524 = shalt.err (!%p521_p10)
}
  0x1e   :  { %s602_s18 = smov 128   ;;  %s603_s19 = smov 8  }
  0x1f   :  { %41 = dma.hbm_to_vmem [thread:$0]  %s753_s2, 2048, %s36_s8, [#allocation9], %s602_s18, %s602_s18, %s603_s19  }
  0x20   :  { %s525_s24 = scalar_lea.hbm %s752_s1, 1024 }
  0x21   :  { %p526_p11 = scmp.ne.s32.totalorder %s752_s1, %s525_s24  ;;  %p529_p12 = scmp.lt.u32.totalorder %s525_s24, %s752_s1 }
  0x23   :  { %p531_p13 = pnand %p529_p12, %p526_p11 }
  0x25   :  { %534 = shalt.err (!%p531_p13)
}
  0x26   :  { %s535_s29 = scalar_lea.vmem %s656_s10, 1024  ;;  %p540_p1 = scmp.lt.s32.totalorder %s656_s10, %s656_s10 }
  0x27   :  { %p536_p0 = scmp.ne.s32.totalorder %s656_s10, %s535_s29  ;;  %p541_p2 = scmp.lt.s32.totalorder %s535_s29, %s535_s29 }
  0x29   :  { %p542_p3 = por %p541_p2, %p540_p1 }
  0x2b   :  { %p543_p4 = pnand %p542_p3, %p536_p0 }
  0x2d   :  { %546 = shalt.err (!%p543_p4)
}
  0x2e   :  { %29 = dma.hbm_to_vmem [thread:$0]  %s752_s1, 1024, %s656_s10, [#allocation6], %s602_s18, %s602_s18, %s603_s19  }
  0x2f   :  { %s604_s7 = smov [#allocation10]   ;;  %s547_s12 = scalar_lea.hbm %s755_s4, 2048 }
  0x30   :  { %s49_s8 = sshll.u32 %s604_s7, 4  ;;  %p548_p5 = scmp.ne.s32.totalorder %s755_s4, %s547_s12  ;;  %s50_s8 = int_to_ptr.vmem [resolvable:$true] %s49_s8 }
  0x31   :  { %p551_p6 = scmp.lt.u32.totalorder %s547_s12, %s755_s4 }
  0x33   :  { %p553_p7 = pnand %p551_p6, %p548_p5 }
  0x35   :  { %556 = shalt.err (!%p553_p7)
}
  0x36   :  { %s557_s16 = scalar_lea.vmem %s50_s8, 2048  ;;  %p562_p9 = scmp.lt.s32.totalorder %s50_s8, %s50_s8 }
  0x37   :  { %p558_p8 = scmp.ne.s32.totalorder %s50_s8, %s557_s16  ;;  %p563_p10 = scmp.lt.s32.totalorder %s557_s16, %s557_s16 }
  0x39   :  { %p564_p11 = por %p563_p10, %p562_p9 }
  0x3b   :  { %p565_p12 = pnand %p564_p11, %p558_p8 }
  0x3d   :  { %568 = shalt.err (!%p565_p12)
}
  0x3e   :  { %55 = dma.hbm_to_vmem [thread:$0]  %s755_s4, 2048, %s50_s8, [#allocation9], %s602_s18, %s602_s18, %s603_s19  }
  0x3f   :  { %593 = dma.done.wait [#allocation6], 1024  }
  0x40   :  { %594 = vsyncadd [#allocation6], 4294966272 }
  0x41   :  { %595 = dma.done.wait [#allocation9], 4096  }
  0x42   :  { %596 = vsyncadd [#allocation9], 4294963200  ;;  %v605_v0 = vmov 0.0|0.0   ;;  %v606_v1 = vmov 0.0   ;;  %s68_s17 = sld [smem:[#allocation4]]  ;;  %s318_s20 = sld [smem:[#allocation4 + $0x1]] }
  0x43   :  { %431 = vmatprep.subr.bf16.mxu0 %v605_v0  ;;  %67 = vst [vmem:[#allocation2] sm:$0xff] %v606_v1  ;;  %vm607_vm0 = vmmov 0   ;;  %s319_s21 = sld [smem:[#allocation4 + $0x2]]  ;;  %s320_s22 = sld [smem:[#allocation4 + $0x3]]  ;;  %455 = vmatprep.subr.bf16.mxu1 %v605_v0  ;;  %v101_v2 = vld [vmem:[#allocation8] sm:$0xff]  ;;  %v102_v3 = vld [vmem:[#allocation8 + $0x8] sm:$0xff] }
  0x44   :  { %393 = vmatprep.mubr.msk.f32.mxu0 %vm607_vm0, %v606_v1  ;;  %428 = vmatprep.mubr.msk.f32.mxu1 %vm607_vm0, %v606_v1  ;;  %s321_s23 = sld [smem:[#allocation4 + $0x4]]  ;;  %s710_s4 = sld [smem:[#allocation4 + $0x5]]  ;;  %v103_v4 = vld [vmem:[#allocation8 + $0x10] sm:$0xff]  ;;  %v432_v5 = vpack.c.bf16 %v102_v3, %v101_v2  ;;  %v104_v6 = vld [vmem:[#allocation8 + $0x18] sm:$0xff]  ;;  %v105_v8 = vld [vmem:[#allocation8 + $0x20] sm:$0xff] }
  0x45   :  { %s712_s18 = sld [smem:[#allocation4 + $0x6]]  ;;  %s714_s19 = sld [smem:[#allocation4 + $0x7]]  ;;  %v435_v7 = vpack.c.bf16 %v104_v6, %v103_v4  ;;  %v106_v9 = vld [vmem:[#allocation8 + $0x28] sm:$0xff]  ;;  %v107_v19 = vld [vmem:[#allocation8 + $0x30] sm:$0xff]  ;;  %v108_v20 = vld [vmem:[#allocation8 + $0x38] sm:$0xff] }
  0x46   :  { %433 = vmatpush3.bf16.msra.mxu0 %v432_v5  ;;  %v438_v15 = vpack.c.bf16 %v106_v9, %v105_v8  ;;  %v441_v21 = vpack.c.bf16 %v108_v20, %v107_v19  ;;  %v109_v22 = vld [vmem:[#allocation8 + $0x40] sm:$0xff]  ;;  %v110_v23 = vld [vmem:[#allocation8 + $0x48] sm:$0xff]  ;;  %v111_v25 = vld [vmem:[#allocation8 + $0x50] sm:$0xff]  ;;  %s608_s12 = smov [#allocation11]  }
  0x47   :  { %434 = vmatprep.subr.bf16.mxu0 %v605_v0  ;;  %v444_v24 = vpack.c.bf16 %v110_v23, %v109_v22  ;;  %v112_v26 = vld [vmem:[#allocation8 + $0x58] sm:$0xff]  ;;  %v113_v28 = vld [vmem:[#allocation8 + $0x60] sm:$0xff]  ;;  %v114_v29 = vld [vmem:[#allocation8 + $0x68] sm:$0xff]  ;;  %s300_s13 = sshll.u32 %s608_s12, 4  ;;  %s301_s13 = int_to_ptr.vmem [resolvable:$true] %s300_s13 }
  0x48   :  { %s69_s24 = scalar_lea.vmem [#allocation5], %s68_s17  ;;  %s73_s25 = scalar_lea.vmem [#allocation5], %s318_s20  ;;  %v447_v27 = vpack.c.bf16 %v112_v26, %v111_v25  ;;  %v450_v30 = vpack.c.bf16 %v114_v29, %v113_v28  ;;  %v115_v31 = vld [vmem:[#allocation8 + $0x70] sm:$0xff]  ;;  %v116_v32 = vld [vmem:[#allocation8 + $0x78] sm:$0xff]  ;;  %v200_v35 = vld [vmem:[#allocation10] sm:$0xff] }
  0x49   :  { %v70_v10 = vld [vmem:[%s69_s24] sm:$0x1]  ;;  %s77_s26 = scalar_lea.vmem [#allocation5], %s319_s21  ;;  %s81_s27 = scalar_lea.vmem [#allocation5], %s320_s22  ;;  %v453_v33 = vpack.c.bf16 %v116_v32, %v115_v31  ;;  %v201_v36 = vld [vmem:[#allocation10 + $0x8] sm:$0xff]  ;;  %v202_v38 = vld [vmem:[#allocation10 + $0x10] sm:$0xff] }
  0x4a   :  { %v74_v11 = vld [vmem:[%s73_s25] sm:$0x1]  ;;  %71 = vst [vmem:[#allocation2] sm:$0x1] %v70_v10  ;;  %s85_s28 = scalar_lea.vmem [#allocation5], %s321_s23  ;;  %436 = vmatpush3.bf16.msra.mxu0 %v435_v7  ;;  %s89_s29 = scalar_lea.vmem [#allocation5], %s710_s4  ;;  %v456_v37 = vpack.c.bf16 %v201_v36, %v200_v35 }
  0x4b   :  { %75 = vst [vmem:[#allocation2 + $0x1] sm:$0x1] %v74_v11  ;;  %v78_v12 = vld [vmem:[%s77_s26] sm:$0x1]  ;;  %s93_s2 = scalar_lea.vmem [#allocation5], %s712_s18  ;;  %s97_s30 = scalar_lea.vmem [#allocation5], %s714_s19  ;;  %437 = vmatprep.subr.bf16.mxu0 %v605_v0 }
  0x4c   :  { %v82_v13 = vld [vmem:[%s81_s27] sm:$0x1]  ;;  %79 = vst [vmem:[#allocation2 + $0x2] sm:$0x1] %v78_v12  ;;  %457 = vmatpush3.bf16.msra.mxu1 %v456_v37  ;;  %v204_v41 = vld [vmem:[#allocation10 + $0x20] sm:$0xff]  ;;  %v205_v42 = vld [vmem:[#allocation10 + $0x28] sm:$0xff]  ;;  %p574_p0 = scmp.lt.s32.totalorder %s301_s13, %s301_s13 }
  0x4d   :  { %v86_v14 = vld [vmem:[%s85_s28] sm:$0x1]  ;;  %83 = vst [vmem:[#allocation2 + $0x3] sm:$0x1] %v82_v13  ;;  %458 = vmatprep.subr.bf16.mxu1 %v605_v0  ;;  %v462_v43 = vpack.c.bf16 %v205_v42, %v204_v41  ;;  %v206_v44 = vld [vmem:[#allocation10 + $0x30] sm:$0xff]  ;;  %v208_v47 = vld [vmem:[#allocation10 + $0x40] sm:$0xff] }
  0x4e   :  { %87 = vst [vmem:[#allocation2 + $0x4] sm:$0x1] %v86_v14  ;;  %v90_v16 = vld [vmem:[%s89_s29] sm:$0x1]  ;;  %439 = vmatpush3.bf16.msra.mxu0 %v438_v15  ;;  %v209_v48 = vld [vmem:[#allocation10 + $0x48] sm:$0xff]  ;;  %v210_v50 = vld [vmem:[#allocation10 + $0x50] sm:$0xff] }
  0x4f   :  { %v94_v17 = vld [vmem:[%s93_s2] sm:$0x1]  ;;  %91 = vst [vmem:[#allocation2 + $0x5] sm:$0x1] %v90_v16  ;;  %440 = vmatprep.subr.bf16.mxu0 %v605_v0  ;;  %v468_v49 = vpack.c.bf16 %v209_v48, %v208_v47  ;;  %v212_v53 = vld [vmem:[#allocation10 + $0x60] sm:$0xff]  ;;  %v213_v54 = vld [vmem:[#allocation10 + $0x68] sm:$0xff] }
  0x50   :  { %v98_v18 = vld [vmem:[%s97_s30] sm:$0x1]  ;;  %95 = vst [vmem:[#allocation2 + $0x6] sm:$0x1] %v94_v17  ;;  %v474_v55 = vpack.c.bf16 %v213_v54, %v212_v53  ;;  %v214_v56 = vld [vmem:[#allocation10 + $0x70] sm:$0xff] }
  0x51   :  { %99 = vst [vmem:[#allocation2 + $0x7] sm:$0x1] %v98_v18  ;;  %v203_v39 = vld [vmem:[#allocation10 + $0x18] sm:$0xff] }
  0x52   :  { %442 = vmatpush3.bf16.msra.mxu0 %v441_v21  ;;  %v459_v40 = vpack.c.bf16 %v203_v39, %v202_v38  ;;  %v207_v45 = vld [vmem:[#allocation10 + $0x38] sm:$0xff] }
  0x53   :  { %443 = vmatprep.subr.bf16.mxu0 %v605_v0  ;;  %v465_v46 = vpack.c.bf16 %v207_v45, %v206_v44  ;;  %v211_v51 = vld [vmem:[#allocation10 + $0x58] sm:$0xff] }
  0x54   :  { %460 = vmatpush3.bf16.msra.mxu1 %v459_v40  ;;  %v471_v52 = vpack.c.bf16 %v211_v51, %v210_v50  ;;  %v215_v57 = vld [vmem:[#allocation10 + $0x78] sm:$0xff] }
  0x55   :  { %461 = vmatprep.subr.bf16.mxu1 %v605_v0  ;;  %v477_v58 = vpack.c.bf16 %v215_v57, %v214_v56  ;;  %v325_v59 = vld [vmem:[%s754_s3] ss:$0 sm:$0xff]  ;;  %s569_s3 = scalar_lea.vmem %s301_s13, 128 }
  0x56   :  { %445 = vmatpush3.bf16.msra.mxu0 %v444_v24  ;;  %p570_p13 = scmp.ne.s32.totalorder %s301_s13, %s569_s3  ;;  %p575_p1 = scmp.lt.s32.totalorder %s569_s3, %s569_s3 }
  0x57   :  { %446 = vmatprep.subr.bf16.mxu0 %v605_v0 }
  0x58   :  { %v100_v34 = vld [vmem:[#allocation2] sm:$0xff]  ;;  %463 = vmatpush3.bf16.msra.mxu1 %v462_v43  ;;  %p576_p2 = por %p575_p1, %p574_p0 }
  0x59   :  { %464 = vmatprep.subr.bf16.mxu1 %v605_v0 }
  0x5a   :  { %448 = vmatpush3.bf16.msra.mxu0 %v447_v27  ;;  %p577_p3 = pnand %p576_p2, %p570_p13 }
  0x5b   :  { %449 = vmatprep.subr.bf16.mxu0 %v605_v0 }
  0x5c   :  { %466 = vmatpush3.bf16.msra.mxu1 %v465_v46 }
  0x5d   :  { %467 = vmatprep.subr.bf16.mxu1 %v605_v0 }
  0x5e   :  { %451 = vmatpush3.bf16.msra.mxu0 %v450_v30 }
  0x5f   :  { %452 = vmatprep.subr.bf16.mxu0 %v605_v0 }
  0x60   :  { %469 = vmatpush3.bf16.msra.mxu1 %v468_v49 }
  0x61   :  { %470 = vmatprep.subr.bf16.mxu1 %v605_v0 }
  0x62   :  { %454 = vmatpush3.bf16.msra.mxu0 %v453_v33 }
  0x64   :  { %472 = vmatpush3.bf16.msra.mxu1 %v471_v52 }
  0x65   :  { %394 = vmatmul.mubr.f32.vlgmr.msra.gmra.mrb[0].mxu0 %v100_v34  ;;  %473 = vmatprep.subr.bf16.mxu1 %v605_v0 }
  0x68   :  { %475 = vmatpush3.bf16.msra.mxu1 %v474_v55 }
  0x69   :  { %476 = vmatprep.subr.bf16.mxu1 %v605_v0  ;;  %v326_v0 = vld [vmem:[%s756_s5] ss:$0 sm:$0xff] }
  0x6c   :  { %478 = vmatpush3.bf16.msra.mxu1 %v477_v58 }
 0x138   :  { %v190_v60 = vpop.f32.mrb[0].mxu0 }
 0x139   :  { %v191_v61 = vadd.f32 %v325_v59, %v190_v60  ;;  %v395_v62 = vpop.f32.mrb[1].mxu0 }
 0x13b   :  { %v194_v63 = vsub.f32 0.0, %v191_v61 }
 0x13d   :  { %v195_v1 = vmul.f32 1.442695, %v194_v63 }
 0x13f   :  { %489 = vpow2.f32 %v195_v1 }
 0x149   :  { %v490_v2 = vpop.eup %489 }
 0x14a   :  { %v197_v3 = vadd.f32 1.0, %v490_v2 }
 0x14c   :  { %491 = vrcp.f32 %v197_v3 }
 0x156   :  { %v492_v4 = vpop.eup %491 }
 0x157   :  { %v199_v5 = vmul.f32 %v492_v4, %v191_v61 }
 0x159   :  { %429 = vmatmul.mubr.f32.vlgmr.msra.gmra.mrb[0].mxu1 %v199_v5 }
 0x22c   :  { %v289_v6 = vpop.f32.mrb[0].mxu1 }
 0x22d   :  { %v290_v7 = vadd.f32 %v326_v0, %v289_v6  ;;  %v430_v8 = vpop.f32.mrb[1].mxu1 }
 0x22f   :  { %293 = vst [vmem:[#allocation11] sm:$0xff] %v290_v7 }
 0x230   :  { %580 = shalt.err (!%p577_p3)
}
 0x231   :  { %s581_s0 = scalar_lea.hbm %s757_s6, 128 }
 0x232   :  { %p582_p4 = scmp.ne.s32.totalorder %s757_s6, %s581_s0  ;;  %p585_p5 = scmp.lt.u32.totalorder %s581_s0, %s757_s6 }
 0x234   :  { %p587_p6 = pnand %p585_p5, %p582_p4 }
 0x236   :  { %590 = shalt.err (!%p587_p6)
}
 0x237   :  { %303 = dma.vmem_to_hbm [thread:$0]  %s301_s13, 128, %s757_s6, [#allocation7]  }
 0x238   :  { %597 = dma.done.wait [#allocation7], 128  }
 0x239   :  { %598 = vsyncadd [#allocation7], 4294967168 }
 0x23a   :  { %307 = vsyncpa [#allocation6], 1 }
 0x23b   :  { %308 = vsyncpa [#allocation9], 1 }
 0x23c   :  { %309 = vsyncpa [#allocation7], 1 }

</bundles_post_ra>
